<compile_context>
chip_gen: v6e
topology: v6e:2x2x1
jax: 0.10.0
libtpu: 0.0.40
codegen_flags: <defaults>
</compile_context>

<pallas_src>
import functools

import jax
import jax.numpy as jnp
import numpy as np
from jax.experimental import pallas as pl
from jax.experimental.pallas import tpu as pltpu

# v7x has 2 TensorCores per chip; on 1-TC chips (v5e/v6e) the extra slot is
# simply one more serial grid iteration (negligible overhead).
NUM_CORE_SLOTS = 2


def _round_up(x: int, m: int) -> int:
    return (x + m - 1) // m * m


def _cdiv(a: int, b: int) -> int:
    return (a + b - 1) // b


def _motion_loss_kernel(pred_ref, gt_ref, w_l1_ref, w_vel_ref, out_ref,
                        acc_ref, *, C):
    """One grid step: fused weighted |diff| + |vel| partial sum.

    pred_ref / gt_ref : [row_tile, T*C] VMEM tiles (rows = (batch, person)
                        sequences; lanes = time-major flattened (t, c)).
    w_l1_ref / w_vel_ref : [1, T*C] precomputed per-lane weights.
    out_ref : [1, 8, 128] per-core-slot output block (broadcast scalar).
    acc_ref : [8, 128] VMEM scratch accumulator (per core).
    Rows padded by the wrapper are zero in BOTH inputs -> zero contribution.
    """
    i = pl.program_id(1)

    @pl.when(i == 0)
    def _init():
        acc_ref[...] = jnp.zeros_like(acc_ref)

    diff = pred_ref[...].astype(jnp.float32) - gt_ref[...].astype(jnp.float32)

    # (pred[t]-pred[t-1]) - (gt[t]-gt[t-1]) == diff[t] - diff[t-1] on the
    # translation channels. One timestep is C lanes, so rolling by C brings
    # diff[t-1] under diff[t]; t==0 wrap-around and non-trans channels have
    # zero weight in w_vel.
    prev = pltpu.roll(diff, shift=C, axis=1)

    tile_sum = jnp.sum(jnp.abs(diff) * w_l1_ref[...] +
                       jnp.abs(diff - prev) * w_vel_ref[...])
    acc_ref[...] += tile_sum  # broadcast scalar; every element = running total

    @pl.when(i == pl.num_programs(1) - 1)
    def _flush():
        out_ref[...] = acc_ref[...][None]


@jax.jit
def motion_loss(dance_pred, dance_gt):
    assert dance_pred.shape == dance_gt.shape
    B, P, T, C = dance_pred.shape
    assert C >= 3, "expected at least the 3 smpl-translation channels"

    R, L = B * P, T * C
    n_trans = B * P * T * 3
    n_poses = B * P * T * (C - 3)
    n_vel = B * P * (T - 1) * 3
    inv_trans = 1.0 / n_trans
    inv_poses = (1.0 / n_poses) if n_poses > 0 else 0.0   # guard C == 3
    inv_vel = (1.0 / n_vel) if n_vel > 0 else 0.0          # guard T == 1

    # Per-lane weights hoisted out of the kernel (trace-time constants).
    lane = np.arange(L)
    c_idx = lane % C
    t_idx = lane // C
    is_trans = c_idx < 3
    w_l1 = jnp.asarray(
        np.where(is_trans, inv_trans, inv_poses).astype(np.float32).reshape(1, L))
    w_vel = jnp.asarray(
        np.where(is_trans & (t_idx >= 1), inv_vel, 0.0).astype(np.float32).reshape(1, L))

    # Lane-dense slab: one (batch, person) sequence per row.
    pred2d = dance_pred.reshape(R, L)
    gt2d = dance_gt.reshape(R, L)

    # Tile sizing: pure byte budget (~2 MiB per input tile), sublane-aligned
    # (16 for 2-byte dtypes, 8 for 4-byte), and no more than ~R/NUM_CORE_SLOTS
    # rows so padding stays bounded by one tile per core slot.
    itemsize = dance_pred.dtype.itemsize
    sub = 16 if itemsize <= 2 else 8
    bytes_per_row = L * itemsize
    budget = 2 * 1024 * 1024
    rows_fit = max(sub, (budget // bytes_per_row) // sub * sub)
    row_tile = min(rows_fit, max(sub, _round_up(_cdiv(R, NUM_CORE_SLOTS), sub)))

    R_pad = _round_up(R, row_tile * NUM_CORE_SLOTS)
    if R_pad != R:
        # Zero-pad both inputs identically -> padded rows have diff == 0 and
        # contribute nothing to any sum.
        pred2d = jnp.pad(pred2d, ((0, R_pad - R), (0, 0)))
        gt2d = jnp.pad(gt2d, ((0, R_pad - R), (0, 0)))

    n_blocks = R_pad // row_tile
    bps = n_blocks // NUM_CORE_SLOTS          # row blocks per core slot

    kernel = functools.partial(_motion_loss_kernel, C=C)

    # Raise the scoped VMEM limit only if the double-buffered footprint would
    # exceed the most conservative default (v5e: 16 MiB scoped).
    tile_bytes = row_tile * L * itemsize
    footprint = (2 * 2 * tile_bytes            # 2 inputs x 2 pipeline buffers
                 + 2 * 2 * L * 4               # 2 weight rows x 2 buffers
                 + 4 * 8 * 128 * 4             # output blocks + scratch
                 + (1 << 20))                  # slack
    cp_kwargs = dict(dimension_semantics=("parallel", "arbitrary"))
    if footprint > 12 * 1024 * 1024:
        cp_kwargs["vmem_limit_bytes"] = min(int(footprint * 3 // 2),
                                            100 * 1024 * 1024)

    out = pl.pallas_call(
        kernel,
        out_shape=jax.ShapeDtypeStruct((NUM_CORE_SLOTS, 8, 128), jnp.float32),
        grid=(NUM_CORE_SLOTS, bps),
        in_specs=[
            pl.BlockSpec((row_tile, L), lambda c, i: (c * bps + i, 0)),
            pl.BlockSpec((row_tile, L), lambda c, i: (c * bps + i, 0)),
            pl.BlockSpec((1, L), lambda c, i: (0, 0)),   # w_l1 (loaded once)
            pl.BlockSpec((1, L), lambda c, i: (0, 0)),   # w_vel (loaded once)
        ],
        out_specs=pl.BlockSpec((1, 8, 128), lambda c, i: (c, 0, 0)),
        scratch_shapes=[pltpu.VMEM((8, 128), jnp.float32)],
        compiler_params=pltpu.CompilerParams(**cp_kwargs),
    )(pred2d, gt2d, w_l1, w_vel)

    # Each core slot's block is filled with its partial sum; combine.
    return jnp.sum(out[:, 0, 0])


def motion_loss_ref(dance_pred, dance_gt):
    # Pure-JAX reference mirroring the PyTorch forward.
    trans_p, poses_p = dance_pred[..., :3], dance_pred[..., 3:]
    trans_g, poses_g = dance_gt[..., :3], dance_gt[..., 3:]
    vel_p = trans_p[:, :, 1:, :] - trans_p[:, :, :-1, :]
    vel_g = trans_g[:, :, 1:, :] - trans_g[:, :, :-1, :]
    l1 = lambda a, b: jnp.mean(jnp.abs(a - b))
    return l1(trans_p, trans_g) + l1(poses_p, poses_g) + l1(vel_p, vel_g)


if __name__ == "__main__":
    # Small shapes implied by the forward: [batch, person, time, 3 + pose_dim]
    B, P, T, C = 2, 2, 16, 8
    k1, k2 = jax.random.split(jax.random.PRNGKey(0))
    dance_pred = jax.random.normal(k1, (B, P, T, C), dtype=jnp.float32)
    dance_gt = jax.random.normal(k2, (B, P, T, C), dtype=jnp.float32)

    loss = jax.block_until_ready(motion_loss(dance_pred, dance_gt))
    ref = jax.block_until_ready(motion_loss_ref(dance_pred, dance_gt))
    assert np.allclose(np.asarray(loss), np.asarray(ref),
                       rtol=1e-5, atol=1e-5), (loss, ref)

    print("KERNEL_OK")
</pallas_src>

<mosaic_0001>
module attributes {stable_mosaic.version = 11 : i64} {
  func.func @_motion_loss_kernel(%arg0: i32, %arg1: i32, %arg2: memref<8x128xf32, #tpu.memory_space<vmem>>, %arg3: memref<8x128xf32, #tpu.memory_space<vmem>>, %arg4: memref<1x128xf32, #tpu.memory_space<vmem>>, %arg5: memref<1x128xf32, #tpu.memory_space<vmem>>, %arg6: memref<1x8x128xf32, #tpu.memory_space<vmem>>, %arg7: memref<8x128xf32, #tpu.memory_space<vmem>>) attributes {dimension_semantics = [#tpu.dimension_semantics<parallel>, #tpu.dimension_semantics<arbitrary>], iteration_bounds = array<i64: 2, 1>, scalar_prefetch = 0 : i64, scratch_operands = 1 : i64, tpu.core_type = #tpu.core_type<tc>, window_params = [{transform_indices = @transform_0, window_bounds = array<i64: 8, 128>}, {transform_indices = @transform_1, window_bounds = array<i64: 8, 128>}, {pipeline_mode = #tpu.pipeline_mode<synchronous>, transform_indices = @transform_2, window_bounds = array<i64: 1, 128>}, {pipeline_mode = #tpu.pipeline_mode<synchronous>, transform_indices = @transform_3, window_bounds = array<i64: 1, 128>}, {transform_indices = @transform_4, window_bounds = array<i64: 1, 8, 128>}]} {
    %c0_i32 = arith.constant 0 : i32
    %0 = arith.cmpi eq, %arg1, %c0_i32 : i32
    %1 = arith.extui %0 : i1 to i32
    %c0_i32_0 = arith.constant 0 : i32
    %2 = arith.cmpi ne, %1, %c0_i32_0 : i32
    scf.if %2 {
      %cst_14 = arith.constant 0.000000e+00 : f32
      %28 = vector.broadcast %cst_14 : f32 to vector<8x128xf32>
      %c0_15 = arith.constant 0 : index
      %c0_16 = arith.constant 0 : index
      %29 = vector.load %arg7[%c0_15, %c0_16] : memref<8x128xf32, #tpu.memory_space<vmem>>, vector<8x128xf32>
      tpu.vector_store %arg7[%c0_15, %c0_16], %28 {strides = array<i32>} : memref<8x128xf32, #tpu.memory_space<vmem>>, vector<8x128xf32>,
    } else {
    }
    %c0 = arith.constant 0 : index
    %c0_1 = arith.constant 0 : index
    %3 = vector.load %arg2[%c0, %c0_1] : memref<8x128xf32, #tpu.memory_space<vmem>>, vector<8x128xf32>
    %c0_2 = arith.constant 0 : index
    %c0_3 = arith.constant 0 : index
    %4 = vector.load %arg3[%c0_2, %c0_3] : memref<8x128xf32, #tpu.memory_space<vmem>>, vector<8x128xf32>
    %5 = arith.subf %3, %4 : vector<8x128xf32>
    %c8_i32 = arith.constant 8 : i32
    %6 = tpu.dynamic_rotate %5 by %c8_i32 dim 1 : vector<8x128xf32>, i32 -> vector<8x128xf32>
    %7 = math.absf %5 : vector<8x128xf32>
    %c0_4 = arith.constant 0 : index
    %c0_5 = arith.constant 0 : index
    %8 = vector.load %arg4[%c0_4, %c0_5] : memref<1x128xf32, #tpu.memory_space<vmem>>, vector<1x128xf32>
    %9 = vector.broadcast %8 : vector<1x128xf32> to vector<8x128xf32>
    %10 = arith.mulf %7, %9 : vector<8x128xf32>
    %11 = arith.subf %5, %6 : vector<8x128xf32>
    %12 = math.absf %11 : vector<8x128xf32>
    %c0_6 = arith.constant 0 : index
    %c0_7 = arith.constant 0 : index
    %13 = vector.load %arg5[%c0_6, %c0_7] : memref<1x128xf32, #tpu.memory_space<vmem>>, vector<1x128xf32>
    %14 = vector.broadcast %13 : vector<1x128xf32> to vector<8x128xf32>
    %15 = arith.mulf %12, %14 : vector<8x128xf32>
    %16 = arith.addf %10, %15 : vector<8x128xf32>
    %17 = vector.shape_cast %16 : vector<8x128xf32> to vector<1x8x128xf32>
    %cst = arith.constant dense<0.000000e+00> : vector<1xf32>
    %18 = vector.multi_reduction <add>, %17, %cst [1, 2] : vector<1x8x128xf32> to vector<1xf32>
    %19 = vector.shape_cast %18 : vector<1xf32> to vector<1x1x1xf32>
    %20 = vector.extract %19[0, 0, 0] : f32 from vector<1x1x1xf32>
    %c0_8 = arith.constant 0 : index
    %c0_9 = arith.constant 0 : index
    %21 = vector.load %arg7[%c0_8, %c0_9] : memref<8x128xf32, #tpu.memory_space<vmem>>, vector<8x128xf32>
    %22 = vector.broadcast %20 : f32 to vector<8x128xf32>
    %23 = arith.addf %21, %22 : vector<8x128xf32>
    %c0_10 = arith.constant 0 : index
    %c0_11 = arith.constant 0 : index
    %24 = vector.load %arg7[%c0_10, %c0_11] : memref<8x128xf32, #tpu.memory_space<vmem>>, vector<8x128xf32>
    tpu.vector_store %arg7[%c0_10, %c0_11], %23 {strides = array<i32>} : memref<8x128xf32, #tpu.memory_space<vmem>>, vector<8x128xf32>,
    %c0_i32_12 = arith.constant 0 : i32
    %25 = arith.cmpi eq, %arg1, %c0_i32_12 : i32
    %26 = arith.extui %25 : i1 to i32
    %c0_i32_13 = arith.constant 0 : i32
    %27 = arith.cmpi ne, %26, %c0_i32_13 : i32
    scf.if %27 {
      %c0_14 = arith.constant 0 : index
      %c0_15 = arith.constant 0 : index
      %28 = vector.load %arg7[%c0_14, %c0_15] : memref<8x128xf32, #tpu.memory_space<vmem>>, vector<8x128xf32>
      %29 = vector.shape_cast %28 : vector<8x128xf32> to vector<1x8x128xf32>
      %c0_16 = arith.constant 0 : index
      %c0_17 = arith.constant 0 : index
      %c0_18 = arith.constant 0 : index
      %30 = vector.load %arg6[%c0_16, %c0_17, %c0_18] : memref<1x8x128xf32, #tpu.memory_space<vmem>>, vector<1x8x128xf32>
      tpu.vector_store %arg6[%c0_16, %c0_17, %c0_18], %29 {strides = array<i32>} : memref<1x8x128xf32, #tpu.memory_space<vmem>>, vector<1x8x128xf32>,
    } else {
    }
    return
  }
  func.func @transform_0(%arg0: i32, %arg1: i32) -> (i32, i32) {
    %c1_i32 = arith.constant 1 : i32
    %0 = arith.muli %arg0, %c1_i32 : i32
    %1 = arith.addi %0, %arg1 : i32
    %c0_i32 = arith.constant 0 : i32
    %c0_i32_0 = arith.constant 0 : i32
    return %1, %c0_i32 : i32, i32
  }
  func.func @transform_1(%arg0: i32, %arg1: i32) -> (i32, i32) {
    %c1_i32 = arith.constant 1 : i32
    %0 = arith.muli %arg0, %c1_i32 : i32
    %1 = arith.addi %0, %arg1 : i32
    %c0_i32 = arith.constant 0 : i32
    %c0_i32_0 = arith.constant 0 : i32
    return %1, %c0_i32 : i32, i32
  }
  func.func @transform_2(%arg0: i32, %arg1: i32) -> (i32, i32) {
    %c0_i32 = arith.constant 0 : i32
    %c0_i32_0 = arith.constant 0 : i32
    %c0_i32_1 = arith.constant 0 : i32
    return %c0_i32, %c0_i32_0 : i32, i32
  }
  func.func @transform_3(%arg0: i32, %arg1: i32) -> (i32, i32) {
    %c0_i32 = arith.constant 0 : i32
    %c0_i32_0 = arith.constant 0 : i32
    %c0_i32_1 = arith.constant 0 : i32
    return %c0_i32, %c0_i32_0 : i32, i32
  }
  func.func @transform_4(%arg0: i32, %arg1: i32) -> (i32, i32, i32) {
    %c0_i32 = arith.constant 0 : i32
    %c0_i32_0 = arith.constant 0 : i32
    %c0_i32_1 = arith.constant 0 : i32
    return %arg0, %c0_i32, %c0_i32_0 : i32, i32, i32
  }
}

</mosaic_0001>

<bundles_post_ra>
// kernel: motion_loss.1
= control target key start
LH: loop header
LB: loop body
LE: loop exit
PB: predicated region body
PF: predicated region fallthrough
CT: control target
= control target key end

     0   :  { %s446_s15 = smov 0   ;;  %s448_s16 = smov 0   ;;  %s493_s0 = inlined_call_operand.vmem [shape: f32[16,128], index: 0, kind: input, shape index: {}]   ;;  %s494_s1 = inlined_call_operand.vmem [shape: f32[16,128], index: 1, kind: input, shape index: {}]   ;;  %s495_s2 = inlined_call_operand.vmem [shape: f32[1,128], index: 2, kind: input, shape index: {}]   ;;  %s496_s3 = inlined_call_operand.vmem [shape: f32[1,128], index: 3, kind: input, shape index: {}]   ;;  %s497_s4 = inlined_call_operand.vmem [shape: f32[2,8,128], index: 4, kind: output, shape index: {}]  }
   0x1   :  { %s450_s17 = smov 0  }
   0x2 LB: > { %s26_s18 = sadd.s32 1, %s414_s16  ;;  %p361_p0 = scmp.ge.s32.totalorder %s418_s17, 1  ;;  %s418_s17 = sphi %s450_s17, %s14_s17   ;;  %s414_s16 = sphi %s448_s16, %s499_s16   ;;  %s410_s15 = sphi %s446_s15, %s498_s15  }
   0x3   : > { %p28_p1 = scmp.ge.s32.totalorder %s26_s18, 2  ;;  %p190_p2 = scmp.lt.s32.totalorder %s418_s17, 3 }
   0x5   : > { %s501_s18 = smov (%p28_p1, %s26_s18), 0  ;;  %p191_p3 = pnand %p361_p0, %p190_p2 }
   0x6   : > { %p221_p4 = scmp.lt.s32.totalorder (!%p191_p3), %s410_s15, 1  ;;  %s420_s26 = smov (!%p191_p3), 8  }
   0x7   : > { %194 = sbr.rel (%p191_p3) target bundleno = 344 (0x158), region = 36 }
   0xc   : > { %s503_s15 = smov (!%p221_p4, %s410_s15), 1  ;;  %v365_v5 = vld [vmem:[%s495_s2] ss:$0 sm:$0xff] }
   0xd   : > { %s464_s19 = sshll.u32 %s503_s15, 3  ;;  %v366_v7 = vld [vmem:[%s496_s3] ss:$0 sm:$0xff] }
   0xe   : > { %s224_s22 = scalar_lea.vmem %s493_s0, %s464_s19  ;;  %s230_s25 = scalar_lea.vmem %s494_s1, %s464_s19 }
   0xf   : > { %v241_v0 = vld [vmem:[%s224_s22] sm:$0xff]  ;;  %s235_s7 = scalar_lea.vmem %s497_s4, %s464_s19 }
  0x10   : > { %v242_v1 = vld [vmem:[%s230_s25] sm:$0xff] }
  0x11   : > { %v243_v2 = vsub.f32 %v241_v0, %v242_v1 }
  0x13   : > { %244 = vrot.lane.b32.xlu0 %v243_v2, %s420_s26  ;;  %v246_v3 = vand.u32 2147483647, %v243_v2 }
  0x15   : > { %v254_v9 = vmul.f32 %v365_v5, %v246_v3 }
  0x85   : > { %v245_v4 = vpop.permute.xlu0 %244 }
  0x86   : > { %v255_v6 = vsub.f32 %v243_v2, %v245_v4 }
  0x88   : > { %v256_v8 = vand.u32 2147483647, %v255_v6 }
  0x8a   : > { %v264_v10 = vmul.f32 %v366_v7, %v256_v8 }
  0x8c   : > { %v265_v11 = vadd.f32 %v264_v10, %v254_v9 }
  0x8e   : > { %266 = vadd.xlane.f32.xlu0 %v265_v11 }
 0x117   : > { %v267_v12 = vpop.xlane.xlu0 %266 }
 0x118   : > { %v268_v13 = vrot.slane %v267_v12, 4 }
 0x11a   : > { %v269_v14 = vadd.f32 %v268_v13, %v267_v12 }
 0x11c   : > { %v270_v15 = vrot.slane %v269_v14, 2 }
 0x11e   : > { %v271_v16 = vadd.f32 %v270_v15, %v269_v14 }
 0x120   : > { %v272_v17 = vrot.slane %v271_v16, 1 }
 0x122   : > { %v273_v18 = vadd.f32 %v272_v17, %v271_v16 }
 0x124   : > { %369 = vpush %v273_v18 }
 0x155   : > { %s370_s8 = spop %369 }
 0x156   : > { %v276_v19 = vstv %s370_s8 }
 0x157   : > { %283 = vst [vmem:[%s235_s7] sm:$0xff] %v276_v19 }
 0x158 PF: > { %s14_s17 = sadd.s32 1, %s418_s17   ;;  %s498_s15 = smov %s414_s16 }
 0x159   : > { %p11_p5 = scmp.ge.s32.totalorder %s14_s17, 4   ;;  %s499_s16 = smov %s501_s18 }
 0x15b   :  { %13 = sbr.rel (!%p11_p5) target bundleno = 2 (0x2), region = 77 }

</bundles_post_ra>
